<compile_context>
chip_gen: v5e
topology: v5e:2x2
jax: 0.10.0
libtpu: 0.0.40
codegen_flags: <defaults>
</compile_context>

<pallas_src>
import random

import numpy as np
import jax
import jax.numpy as jnp
from jax.experimental import pallas as pl
from jax.experimental.pallas import tpu as pltpu


_VMEM_BUDGET = 40 << 20  # tile-selection budget; fits v7x (64 MiB) and v5e/v6e


def _round_up(x, m):
    return ((x + m - 1) // m) * m


# ----------------------------- Pallas kernels -------------------------------
def _gcn_agg_resident_kernel(mask_ref, embed_ref, invdeg_ref, out_ref):
    """Fast path: embed tile is the whole (scaled) embedding, VMEM-resident.

    mask_ref   : (tm, Uq) bf16  binary adjacency row tile
    embed_ref  : (Uq, Dq) bf16  embedding with c_inv_sqrt folded in (resident)
    invdeg_ref : (tm, 1)  f32   guarded 1/num_neigh
    out_ref    : (tm, Dq) f32
    """
    acc = jnp.dot(mask_ref[...], embed_ref[...],
                  preferred_element_type=jnp.float32)
    out_ref[...] = (acc * invdeg_ref[...]).astype(out_ref.dtype)


def _gcn_agg_tiled_kernel(mask_ref, embed_ref, invdeg_ref, out_ref):
    """Fallback: 3-axis grid (i, j, k); accumulate directly into the resident
    f32 output block (its block index is constant across k)."""
    k = pl.program_id(2)

    @pl.when(k == 0)
    def _init():
        out_ref[...] = jnp.zeros_like(out_ref)

    out_ref[...] += jnp.dot(mask_ref[...], embed_ref[...],
                            preferred_element_type=jnp.float32)

    @pl.when(k == pl.num_programs(2) - 1)
    def _finalize():
        out_ref[...] = out_ref[...] * invdeg_ref[...]


# ------------------------------- wrapper ------------------------------------
def gcn_aggregate_pallas(mask_np, embed_np):
    """mask_np: [N, U] host 0/1 floats; embed_np: [U, D] host float32 -> [N, D] f32."""
    mask_np = np.asarray(mask_np, dtype=np.float32)
    embed_np = np.asarray(embed_np, dtype=np.float32)
    N, U = mask_np.shape
    U2, D = embed_np.shape
    assert U == U2

    # ---- host prepass: degree, symmetric-norm column scale, operand fold ----
    num_neigh = mask_np.sum(axis=1, keepdims=True)                       # [N,1]
    inv_deg = np.where(num_neigh > 0.0,
                       1.0 / np.maximum(num_neigh, 1.0), 0.0).astype(np.float32)
    colsum = (mask_np * inv_deg).sum(axis=0, keepdims=True)              # [1,U]
    c_inv_sqrt = np.where(colsum > 0.0,
                          1.0 / np.sqrt(np.maximum(colsum, 1e-30)),
                          0.0).astype(np.float32)
    embed_scaled = (c_inv_sqrt.T * embed_np).astype(np.float32)          # [U,D]

    # ---- tile sizes ----
    Dp = _round_up(D, 128)
    Ur = _round_up(U, 128)

    tm = min(512, _round_up(N, 16))
    if _round_up(N, tm) == tm and N > 32:
        # v7x megacore: make sure there are >= 2 row tiles when there is work.
        tm = _round_up(-(-N // 2), 16)
    Np = _round_up(N, tm)

    # Footprint if the whole scaled embedding stays VMEM-resident.
    resident_fp = (2 * Ur * Dp * 2            # embed (worst-case double buffer)
                   + 2 * tm * Ur * 2          # mask row tiles
                   + 2 * tm * Dp * 4          # output tiles
                   + 2 * tm * 128 * 4)        # invdeg tiles (lane padded)
    use_resident = resident_fp <= _VMEM_BUDGET

    if use_resident:
        Uq, Dq = Ur, Dp
        grid = (Np // tm,)
        in_specs = [
            pl.BlockSpec((tm, Uq), lambda i: (i, 0)),     # mask row tile
            pl.BlockSpec((Uq, Dq), lambda i: (0, 0)),     # embed, VMEM-resident
            pl.BlockSpec((tm, 1), lambda i: (i, 0)),      # 1/deg column
        ]
        out_spec = pl.BlockSpec((tm, Dq), lambda i: (i, 0))
        kernel = _gcn_agg_resident_kernel
        dims = ("parallel",)
        footprint = resident_fp
    else:
        tn = Dp if Dp <= 1024 else 512
        Dq = _round_up(D, tn)

        def _fp(tm_, tn_, tk_):
            return (2 * tm_ * tk_ * 2 + 2 * tk_ * tn_ * 2
                    + 2 * tm_ * tn_ * 4 + 2 * tm_ * 128 * 4)

        tk = 128
        for cand in (2048, 1024, 512, 256, 128):
            tk = min(cand, Ur)
            if _fp(tm, tn, tk) <= _VMEM_BUDGET:
                break
        while _fp(tm, tn, tk) > _VMEM_BUDGET and tm > 16:
            tm = max(16, _round_up(tm // 2, 16))
        Np = _round_up(N, tm)
        Uq = _round_up(U, tk)
        grid = (Np // tm, Dq // tn, Uq // tk)
        in_specs = [
            pl.BlockSpec((tm, tk), lambda i, j, k: (i, k)),   # mask tile
            pl.BlockSpec((tk, tn), lambda i, j, k: (k, j)),   # embed tile
            pl.BlockSpec((tm, 1), lambda i, j, k: (i, 0)),    # 1/deg column
        ]
        out_spec = pl.BlockSpec((tm, tn), lambda i, j, k: (i, j))
        kernel = _gcn_agg_tiled_kernel
        dims = ("parallel", "parallel", "arbitrary")
        footprint = _fp(tm, tn, tk)

    # ---- host-side padding + bf16 cast (mask entries 0/1 -> lossless) ----
    mask_p = np.zeros((Np, Uq), dtype=jnp.bfloat16)
    mask_p[:N, :U] = mask_np.astype(jnp.bfloat16)
    embed_p = np.zeros((Uq, Dq), dtype=jnp.bfloat16)
    embed_p[:U, :D] = embed_scaled.astype(jnp.bfloat16)
    invdeg_p = np.zeros((Np, 1), dtype=np.float32)
    invdeg_p[:N, :] = inv_deg

    bytes_accessed = Np * Uq * 2 + Uq * Dq * 2 + Np * Dq * 4 + Np * 4
    cost = pl.CostEstimate(flops=2 * Np * Uq * Dq, transcendentals=0,
                           bytes_accessed=bytes_accessed)
    vmem_limit = min(_round_up(footprint + (8 << 20), 1 << 20), 48 << 20)

    out_p = pl.pallas_call(
        kernel,
        out_shape=jax.ShapeDtypeStruct((Np, Dq), jnp.float32),
        grid=grid,
        in_specs=in_specs,
        out_specs=out_spec,
        compiler_params=pltpu.CompilerParams(
            dimension_semantics=dims,
            vmem_limit_bytes=vmem_limit,
        ),
        cost_estimate=cost,
    )(jnp.asarray(mask_p), jnp.asarray(embed_p), jnp.asarray(invdeg_p))

    return out_p[:N, :D]


# --------------------------- host-side glue ---------------------------------
def build_mask_and_embed(nodes, to_neighs, emb_table, num_sample=10, gcn=False):
    """Mirrors the Python part of GCNAggregator.forward (sampling + mask)."""
    _set = set
    if num_sample is not None:
        _sample = random.sample
        samp_neighs = [
            _set(_sample(sorted(to_neigh), num_sample))
            if len(to_neigh) >= num_sample else to_neigh
            for to_neigh in to_neighs
        ]
    else:
        samp_neighs = to_neighs
    if gcn:
        samp_neighs = [
            set.union(samp_neigh, _set([nodes[i]]))
            for i, samp_neigh in enumerate(samp_neighs)
        ]
    unique_nodes_list = sorted(set.union(*samp_neighs))
    unique_nodes = {n: i for i, n in enumerate(unique_nodes_list)}

    N = len(samp_neighs)
    U = len(unique_nodes_list)
    mask_np = np.zeros((N, max(U, 1)), dtype=np.float32)
    for i, samp_neigh in enumerate(samp_neighs):
        for n in samp_neigh:
            mask_np[i, unique_nodes[n]] = 1.0

    # embed_matrix = features(unique_nodes_list)   (host-side row gather)
    embed_np = np.asarray(emb_table)[np.asarray(unique_nodes_list)]      # [U, D]
    return mask_np, embed_np.astype(np.float32)


def reference(mask, embed):
    """Pure-JAX f32 reference of the dense part (torch semantics, guarded div)."""
    num_neigh = mask.sum(1, keepdims=True)
    inv_deg = jnp.where(num_neigh > 0, 1.0 / num_neigh, 0.0)
    m = mask * inv_deg
    rowsum = m.sum(1, keepdims=True)
    r = jnp.where(rowsum > 0, rowsum ** -0.5, 0.0)
    colsum = m.sum(0, keepdims=True)
    c = jnp.where(colsum > 0, colsum ** -0.5, 0.0)
    return (r * m * c) @ embed


if __name__ == "__main__":
    random.seed(0)

    # Small synthetic graph: 8 target nodes, 32 total nodes, hidden dim 64.
    NUM_NODES_TOTAL = 32
    N = 8          # number of target nodes (rows of mask)
    D = 64         # embedding dimension
    NUM_SAMPLE = 10

    # Deterministic embedding table (acts as the `features` nn.Embedding).
    key = jax.random.PRNGKey(0)
    emb_table = np.asarray(
        jax.random.normal(key, (NUM_NODES_TOTAL, D), dtype=jnp.float32))

    # Deterministic adjacency (neighbor sets of varying sizes).
    nodes = list(range(N))
    to_neighs = []
    for i in range(N):
        deg = 3 + (i * 5) % 13  # between 3 and 15 neighbors
        neighs = {(i * 7 + 3 * j + 1) % NUM_NODES_TOTAL for j in range(deg)}
        neighs.discard(i)
        if not neighs:
            neighs = {(i + 1) % NUM_NODES_TOTAL}
        to_neighs.append(neighs)

    mask_np, embed_np = build_mask_and_embed(
        nodes, to_neighs, emb_table, num_sample=NUM_SAMPLE, gcn=False
    )

    out = gcn_aggregate_pallas(mask_np, embed_np)
    out = jax.block_until_ready(out)

    ref = reference(jnp.asarray(mask_np), jnp.asarray(embed_np))
    assert out.shape == (N, D)
    assert not bool(jnp.any(jnp.isnan(out))), "NaNs in kernel output"
    # Tolerance accounts for bf16 MXU operands (f32 accumulation).
    assert jnp.allclose(out, ref, atol=3e-2, rtol=3e-2), "mismatch vs reference"

    print("KERNEL_OK")
</pallas_src>

<mosaic_0001>
module attributes {stable_mosaic.version = 11 : i64} {
  func.func @_gcn_agg_resident_kernel(%arg0: i32, %arg1: memref<16x128xbf16, #tpu.memory_space<vmem>>, %arg2: memref<128x128xbf16, #tpu.memory_space<vmem>>, %arg3: memref<16x1xf32, #tpu.memory_space<vmem>>, %arg4: memref<16x128xf32, #tpu.memory_space<vmem>>) attributes {dimension_semantics = [#tpu.dimension_semantics<parallel>], iteration_bounds = array<i64: 1>, scalar_prefetch = 0 : i64, scratch_operands = 0 : i64, tpu.core_type = #tpu.core_type<tc>, window_params = [{transform_indices = @transform_0, window_bounds = array<i64: 16, 128>}, {pipeline_mode = #tpu.pipeline_mode<synchronous>, transform_indices = @transform_1, window_bounds = array<i64: 128, 128>}, {transform_indices = @transform_2, window_bounds = array<i64: 16, 1>}, {transform_indices = @transform_3, window_bounds = array<i64: 16, 128>}]} {
    %c0 = arith.constant 0 : index
    %c0_0 = arith.constant 0 : index
    %0 = vector.load %arg1[%c0, %c0_0] : memref<16x128xbf16, #tpu.memory_space<vmem>>, vector<16x128xbf16>
    %c0_1 = arith.constant 0 : index
    %c0_2 = arith.constant 0 : index
    %1 = vector.load %arg2[%c0_1, %c0_2] : memref<128x128xbf16, #tpu.memory_space<vmem>>, vector<128x128xbf16>
    %cst = arith.constant dense<0.000000e+00> : vector<16x128xf32>
    %2 = tpu.matmul %0, %1, %cst {dimension_numbers = #tpu.dot_dimension_numbers<[1], [0], [0], [1], [0, 0, 1, 1], [], []>} : vector<16x128xbf16>, vector<128x128xbf16>, vector<16x128xf32> -> vector<16x128xf32>
    %c0_3 = arith.constant 0 : index
    %c0_4 = arith.constant 0 : index
    %3 = vector.load %arg3[%c0_3, %c0_4] : memref<16x1xf32, #tpu.memory_space<vmem>>, vector<16x1xf32>
    %4 = vector.broadcast %3 : vector<16x1xf32> to vector<16x128xf32>
    %5 = arith.mulf %2, %4 : vector<16x128xf32>
    %c0_5 = arith.constant 0 : index
    %c0_6 = arith.constant 0 : index
    %6 = vector.load %arg4[%c0_5, %c0_6] : memref<16x128xf32, #tpu.memory_space<vmem>>, vector<16x128xf32>
    tpu.vector_store %arg4[%c0_5, %c0_6], %5 {strides = array<i32>} : memref<16x128xf32, #tpu.memory_space<vmem>>, vector<16x128xf32>,
    return
  }
  func.func @transform_0(%arg0: i32) -> (i32, i32) {
    %c0_i32 = arith.constant 0 : i32
    %c0_i32_0 = arith.constant 0 : i32
    return %arg0, %c0_i32 : i32, i32
  }
  func.func @transform_1(%arg0: i32) -> (i32, i32) {
    %c0_i32 = arith.constant 0 : i32
    %c0_i32_0 = arith.constant 0 : i32
    %c0_i32_1 = arith.constant 0 : i32
    return %c0_i32, %c0_i32_0 : i32, i32
  }
  func.func @transform_2(%arg0: i32) -> (i32, i32) {
    %c0_i32 = arith.constant 0 : i32
    %c0_i32_0 = arith.constant 0 : i32
    return %arg0, %c0_i32 : i32, i32
  }
  func.func @transform_3(%arg0: i32) -> (i32, i32) {
    %c0_i32 = arith.constant 0 : i32
    %c0_i32_0 = arith.constant 0 : i32
    return %arg0, %c0_i32 : i32, i32
  }
}

</mosaic_0001>

<bundles_post_ra>
// kernel: tpu_custom_call.1
= control target key start
LH: loop header
LB: loop body
LE: loop exit
PB: predicated region body
PF: predicated region fallthrough
CT: control target
= control target key end

     0   :  { %8 = vsyncpa [#allocation3], 0  ;;  %s299_s0 = inlined_call_operand.vmem [shape: bf16[16,128], index: 0, kind: input, shape index: {}]   ;;  %s300_s1 = inlined_call_operand.hbm [shape: bf16[128,128], index: 1, kind: input, shape index: {}]   ;;  %s301_s2 = inlined_call_operand.vmem [shape: f32[16,1], index: 2, kind: input, shape index: {}]   ;;  %s302_s3 = inlined_call_operand.hbm [shape: f32[16,128], index: 3, kind: output, shape index: {}]  }
   0x1   :  { %9 = vsyncpa [#allocation4], 0  ;;  %s16_s14 = sshll.u32 %s300_s1, 4  ;;  %s257_s15 = smov [#allocation2]   ;;  %s17_s14 = int_to_ptr.hbm [resolvable:$true] %s16_s14 }
   0x2   :  { %s18_s16 = sshll.u32 %s257_s15, 4  ;;  %s258_s17 = smov 64   ;;  %s19_s16 = int_to_ptr.vmem [resolvable:$true] %s18_s16 }
   0x3   :  { %s259_s18 = smov 4  }
   0x4   :  { %24 = dma.hbm_to_vmem [thread:$0]  %s17_s14, 1024, %s19_s16, [#allocation3], %s258_s17, %s258_s17, %s259_s18  }
   0x5   :  { %253 = dma.done.wait [#allocation3], 1024  }
   0x6   :  { %254 = vsyncadd [#allocation3], 4294966272  ;;  %v196_v0 = vld [vmem:[#allocation2 + $0x38] sm:$0xff]  ;;  %v195_v1 = vld [vmem:[#allocation2 + $0x30] sm:$0xff]  ;;  %v260_v2 = vmov 0   ;;  %s139_s27 = sshll.u32 %s302_s3, 4  ;;  %s140_s27 = int_to_ptr.hbm [resolvable:$true] %s139_s27 }
   0x7   :  { %103 = vmatpush.bf16.msra.mxu0 %v196_v0  ;;  %204 = vset.pattern.permute.xlu0 %v260_v2  ;;  %v117_v3 = vld [vmem:[%s301_s2] sm:$0xff]  ;;  %v194_v4 = vld [vmem:[#allocation2 + $0x28] sm:$0xff]  ;;  %v192_v7 = vld [vmem:[#allocation2 + $0x18] sm:$0xff]  ;;  %s262_s28 = smov 128  }
   0x8   :  { %121 = vperm.xlu0 %204, %v117_v3   ;;  %v118_v5 = vld [vmem:[%s301_s2 + $0x8] sm:$0xff]  ;;  %v193_v6 = vld [vmem:[#allocation2 + $0x20] sm:$0xff]  ;;  %v191_v8 = vld [vmem:[#allocation2 + $0x10] sm:$0xff]  ;;  %s261_s2 = smov [#allocation5]  }
   0x9   :  { %v190_v9 = vld [vmem:[#allocation2 + $0x8] sm:$0xff]  ;;  %v189_v10 = vld [vmem:[#allocation2] sm:$0xff]  ;;  %s137_s24 = sshll.u32 %s261_s2, 4  ;;  %s138_s24 = int_to_ptr.vmem [resolvable:$true] %s137_s24 }
   0xa   :  { %v188_v11 = vld [vmem:[%s299_s0] sm:$0xff]  ;;  %s263_s0 = smov 8  }
   0xb   :  { %104 = vmatpush.bf16.msra.mxu0 %v195_v1 }
   0xf   :  { %105 = vmatpush.bf16.msra.mxu0 %v194_v4 }
  0x10   :  { %126 = vperm.xlu0 %204, %v118_v5  }
  0x13   :  { %106 = vmatpush.bf16.msra.mxu0 %v193_v6 }
  0x17   :  { %107 = vmatpush.bf16.msra.mxu0 %v192_v7 }
  0x1b   :  { %108 = vmatpush.bf16.msra.mxu0 %v191_v8 }
  0x1f   :  { %109 = vmatpush.bf16.msra.mxu0 %v190_v9 }
  0x23   :  { %110 = vmatpush.bf16.msra.mxu0 %v189_v10 }
  0x26   :  { %111 = vmatmul.bf16.vlgmr.msra.gmra.mxu0 %v188_v11 }
  0x7a   :  { %v122_v12 = vpop.permute.xlu0 %121 }
  0x82   :  { %v127_v15 = vpop.permute.xlu0 %126 }
  0xa3   :  { %v112_v13 = vpop.f32.mrf.mxu0 }
  0xa4   :  { %v129_v14 = vmul.f32 %v122_v12, %v112_v13 }
  0xa6   :  { %131 = vst [vmem:[#allocation5] sm:$0xff] %v129_v14 }
  0xab   :  { %v114_v16 = vpop.f32.mrf.mxu0 }
  0xac   :  { %v130_v17 = vmul.f32 %v127_v15, %v114_v16 }
  0xae   :  { %132 = vst [vmem:[#allocation5 + $0x8] sm:$0xff] %v130_v17 }
  0xaf   :  { %145 = dma.vmem_to_hbm [thread:$0]  %s138_s24, 256, %s140_s27, [#allocation4], %s262_s28, %s262_s28, %s263_s0  }
  0xb0   :  { %255 = dma.done.wait [#allocation4], 256  }
  0xb1   :  { %256 = vsyncadd [#allocation4], 4294967040 }
  0xb2   :  { %150 = vsyncpa [#allocation3], 1 }
  0xb3   :  { %151 = vsyncpa [#allocation4], 1 }

</bundles_post_ra>
